<compile_context>
chip_gen: v7x
topology: tpu7x:2x2x1
jax: 0.10.0
libtpu: 0.0.40
codegen_flags: <defaults>
</compile_context>

<pallas_src>
import jax
import jax.numpy as jnp
from jax.experimental import pallas as pl


def rnn_multi_forward(xs, w_ih, w_hh, b_ih, b_hh, w_out, b_out):
    """GRU over xs (T, B, H), take final hidden state, then Sigmoid(Linear) -> (B, Z).

    Parameters are in PyTorch layout:
      w_ih, w_hh : (3H, H)  gate order [r, z, n]   (nn.GRU weight_ih_l0 / weight_hh_l0)
      b_ih, b_hh : (3H,)
      w_out      : (Z, H)   (nn.Linear weight)
      b_out      : (Z,)
    """
    T, B, H = xs.shape
    Z = w_out.shape[0]

    # --- wrapper-side weight re-layout (tiny, traced JAX ops) -------------------------
    w_ih_f = jnp.transpose(w_ih).astype(jnp.float32)          # (H, 3H) columns [r|z|n]
    w_hh_f = jnp.transpose(w_hh).astype(jnp.float32)          # (H, 3H)
    # Fold the hidden-side r/z biases into the input-side bias; the n-gate hidden bias
    # must stay separate because of the r * (h @ W_hn^T + b_hn) term.
    b_i_f = b_ih + jnp.concatenate([b_hh[: 2 * H], jnp.zeros((H,), b_hh.dtype)])
    b_i_f = b_i_f.reshape(1, 3 * H).astype(jnp.float32)       # (1, 3H)
    b_hn = b_hh[2 * H:].reshape(1, H).astype(jnp.float32)     # (1, H)
    w_out_t = jnp.transpose(w_out).astype(jnp.float32)        # (H, Z)
    b_out2 = b_out.reshape(1, Z).astype(jnp.float32)          # (1, Z)
    x2d = xs.reshape(T * B, H).astype(jnp.float32)            # (T*B, H)

    # --- kernel: one invocation, everything VMEM-resident -----------------------------
    def kernel(x_ref, wih_ref, whh_ref, bi_ref, bhn_ref, wout_ref, bout_ref, o_ref):
        # Hoisted, T/B-parallel input projection: one fat MXU matmul for all time steps.
        i_all = jnp.dot(x_ref[...], wih_ref[...],
                        preferred_element_type=jnp.float32) + bi_ref[...]   # (T*B, 3H)

        whh = whh_ref[...]                                    # (H, 3H), resident in vregs
        b_hn_b = jnp.broadcast_to(bhn_ref[...], (B, H))       # hoist broadcast out of loop

        h = jnp.zeros((B, H), jnp.float32)                    # h0 = 0, carried in vregs
        # Serial GRU recurrence, fully unrolled (T is small & static).
        for t in range(T):
            it = i_all[t * B:(t + 1) * B, :]                  # (B, 3H) precomputed x-side
            hn = jnp.dot(h, whh, preferred_element_type=jnp.float32)   # (B, 3H)
            rz = jax.nn.sigmoid(it[:, : 2 * H] + hn[:, : 2 * H])
            r = rz[:, :H]
            z = rz[:, H:]
            n = jnp.tanh(it[:, 2 * H:] + r * (hn[:, 2 * H:] + b_hn_b))
            h = (1.0 - z) * n + z * h

        # out = Sigmoid(Linear(h_T))
        logits = jnp.dot(h, wout_ref[...],
                         preferred_element_type=jnp.float32) + bout_ref[...]
        o_ref[...] = jax.nn.sigmoid(logits).astype(o_ref.dtype)

    flops = (2 * T * B * H * 3 * H          # input-side projection
             + T * 2 * B * H * 3 * H        # recurrent matmuls
             + 2 * B * H * Z)               # output Linear
    transcendentals = 3 * T * B * H + B * Z
    bytes_accessed = 4 * (T * B * H + 2 * H * 3 * H + 3 * H + H + H * Z + Z + B * Z)

    return pl.pallas_call(
        kernel,
        out_shape=jax.ShapeDtypeStruct((B, Z), jnp.float32),
        cost_estimate=pl.CostEstimate(flops=flops,
                                      transcendentals=transcendentals,
                                      bytes_accessed=bytes_accessed),
    )(x2d, w_ih_f, w_hh_f, b_i_f, b_hn, w_out_t, b_out2)


def _reference_forward(xs, w_ih, w_hh, b_ih, b_hh, w_out, b_out):
    """Pure-JAX reference of the same GRU + Linear + Sigmoid (PyTorch semantics)."""
    T, B, H = xs.shape

    def step(h, x):
        gi = x @ w_ih.T + b_ih                                # (B, 3H)
        gh = h @ w_hh.T + b_hh                                # (B, 3H)
        i_r, i_z, i_n = gi[:, :H], gi[:, H:2 * H], gi[:, 2 * H:]
        h_r, h_z, h_n = gh[:, :H], gh[:, H:2 * H], gh[:, 2 * H:]
        r = jax.nn.sigmoid(i_r + h_r)
        z = jax.nn.sigmoid(i_z + h_z)
        n = jnp.tanh(i_n + r * h_n)
        h_new = (1.0 - z) * n + z * h
        return h_new, None

    h0 = jnp.zeros((B, H), jnp.float32)
    hT, _ = jax.lax.scan(step, h0, xs)
    return jax.nn.sigmoid(hT @ w_out.T + b_out)


if __name__ == "__main__":
    # Small shapes implied by the forward: seq=8, batch=4, h_dim=32, z_dim=16.
    T, B, H, Z = 8, 4, 32, 16

    key = jax.random.PRNGKey(0)
    k_xs, k_wih, k_whh, k_bih, k_bhh, k_wo, k_bo = jax.random.split(key, 7)

    # PyTorch-style uniform(-1/sqrt(H), 1/sqrt(H)) init, PyTorch weight layouts.
    s = 1.0 / jnp.sqrt(jnp.float32(H))
    w_ih = jax.random.uniform(k_wih, (3 * H, H), jnp.float32, -s, s)   # [r; z; n]
    w_hh = jax.random.uniform(k_whh, (3 * H, H), jnp.float32, -s, s)
    b_ih = jax.random.uniform(k_bih, (3 * H,), jnp.float32, -s, s)
    b_hh = jax.random.uniform(k_bhh, (3 * H,), jnp.float32, -s, s)
    w_out = jax.random.uniform(k_wo, (Z, H), jnp.float32, -s, s)
    b_out = jax.random.uniform(k_bo, (Z,), jnp.float32, -s, s)

    # xs already "embedded" (remote RPC embedding modeled as identity).
    xs = jax.random.normal(k_xs, (T, B, H), jnp.float32)

    out = rnn_multi_forward(xs, w_ih, w_hh, b_ih, b_hh, w_out, b_out)
    out = jax.block_until_ready(out)

    ref = _reference_forward(xs, w_ih, w_hh, b_ih, b_hh, w_out, b_out)
    assert out.shape == (B, Z)
    assert jnp.allclose(out, ref, atol=2e-5, rtol=2e-5), "mismatch vs JAX reference"

    print("KERNEL_OK")
</pallas_src>

<mosaic_0001>
module attributes {stable_mosaic.version = 11 : i64} {
  func.func @kernel(%arg0: memref<32x32xf32, #tpu.memory_space<vmem>>, %arg1: memref<32x96xf32, #tpu.memory_space<vmem>>, %arg2: memref<32x96xf32, #tpu.memory_space<vmem>>, %arg3: memref<1x96xf32, #tpu.memory_space<vmem>>, %arg4: memref<1x32xf32, #tpu.memory_space<vmem>>, %arg5: memref<32x16xf32, #tpu.memory_space<vmem>>, %arg6: memref<1x16xf32, #tpu.memory_space<vmem>>, %arg7: memref<4x16xf32, #tpu.memory_space<vmem>>) attributes {dimension_semantics = [], scalar_prefetch = 0 : i64, scratch_operands = 0 : i64, tpu.core_type = #tpu.core_type<tc>} {
    %c0 = arith.constant 0 : index
    %c0_0 = arith.constant 0 : index
    %0 = vector.load %arg0[%c0, %c0_0] : memref<32x32xf32, #tpu.memory_space<vmem>>, vector<32x32xf32>
    %c0_1 = arith.constant 0 : index
    %c0_2 = arith.constant 0 : index
    %1 = vector.load %arg1[%c0_1, %c0_2] : memref<32x96xf32, #tpu.memory_space<vmem>>, vector<32x96xf32>
    %cst = arith.constant dense<0.000000e+00> : vector<32x96xf32>
    %2 = tpu.matmul %0, %1, %cst {dimension_numbers = #tpu.dot_dimension_numbers<[1], [0], [0], [1], [0, 0, 1, 1], [], []>} : vector<32x32xf32>, vector<32x96xf32>, vector<32x96xf32> -> vector<32x96xf32>
    %c0_3 = arith.constant 0 : index
    %c0_4 = arith.constant 0 : index
    %3 = vector.load %arg3[%c0_3, %c0_4] : memref<1x96xf32, #tpu.memory_space<vmem>>, vector<1x96xf32>
    %4 = vector.broadcast %3 : vector<1x96xf32> to vector<32x96xf32>
    %5 = arith.addf %2, %4 : vector<32x96xf32>
    %c0_5 = arith.constant 0 : index
    %c0_6 = arith.constant 0 : index
    %6 = vector.load %arg2[%c0_5, %c0_6] : memref<32x96xf32, #tpu.memory_space<vmem>>, vector<32x96xf32>
    %c0_7 = arith.constant 0 : index
    %c0_8 = arith.constant 0 : index
    %7 = vector.load %arg4[%c0_7, %c0_8] : memref<1x32xf32, #tpu.memory_space<vmem>>, vector<1x32xf32>
    %8 = vector.shape_cast %7 : vector<1x32xf32> to vector<1x32xf32>
    %9 = vector.broadcast %8 : vector<1x32xf32> to vector<4x32xf32>
    %cst_9 = arith.constant 0.000000e+00 : f32
    %10 = vector.broadcast %cst_9 : f32 to vector<4x32xf32>
    %11 = vector.extract_strided_slice %5 {offsets = [0, 0], sizes = [4, 96], strides = [1, 1]} : vector<32x96xf32> to vector<4x96xf32>
    %cst_10 = arith.constant dense<0.000000e+00> : vector<4x96xf32>
    %12 = tpu.matmul %10, %6, %cst_10 {dimension_numbers = #tpu.dot_dimension_numbers<[1], [0], [0], [1], [0, 0, 1, 1], [], []>} : vector<4x32xf32>, vector<32x96xf32>, vector<4x96xf32> -> vector<4x96xf32>
    %13 = vector.extract_strided_slice %11 {offsets = [0, 0], sizes = [4, 64], strides = [1, 1]} : vector<4x96xf32> to vector<4x64xf32>
    %14 = vector.extract_strided_slice %12 {offsets = [0, 0], sizes = [4, 64], strides = [1, 1]} : vector<4x96xf32> to vector<4x64xf32>
    %15 = arith.addf %13, %14 : vector<4x64xf32>
    %16 = arith.negf %15 : vector<4x64xf32>
    %17 = math.exp %16 : vector<4x64xf32>
    %cst_11 = arith.constant 1.000000e+00 : f32
    %18 = vector.broadcast %cst_11 : f32 to vector<4x64xf32>
    %19 = arith.addf %18, %17 : vector<4x64xf32>
    %20 = arith.divf %18, %19 : vector<4x64xf32>
    %21 = vector.extract_strided_slice %20 {offsets = [0, 0], sizes = [4, 32], strides = [1, 1]} : vector<4x64xf32> to vector<4x32xf32>
    %22 = vector.extract_strided_slice %20 {offsets = [0, 32], sizes = [4, 32], strides = [1, 1]} : vector<4x64xf32> to vector<4x32xf32>
    %23 = vector.extract_strided_slice %11 {offsets = [0, 64], sizes = [4, 32], strides = [1, 1]} : vector<4x96xf32> to vector<4x32xf32>
    %24 = vector.extract_strided_slice %12 {offsets = [0, 64], sizes = [4, 32], strides = [1, 1]} : vector<4x96xf32> to vector<4x32xf32>
    %25 = arith.addf %24, %9 : vector<4x32xf32>
    %26 = arith.mulf %21, %25 : vector<4x32xf32>
    %27 = arith.addf %23, %26 : vector<4x32xf32>
    %28 = math.tanh %27 : vector<4x32xf32>
    %cst_12 = arith.constant 1.000000e+00 : f32
    %29 = vector.broadcast %cst_12 : f32 to vector<4x32xf32>
    %30 = arith.subf %29, %22 : vector<4x32xf32>
    %31 = arith.mulf %30, %28 : vector<4x32xf32>
    %32 = arith.mulf %22, %10 : vector<4x32xf32>
    %33 = arith.addf %31, %32 : vector<4x32xf32>
    %34 = vector.extract_strided_slice %5 {offsets = [4, 0], sizes = [4, 96], strides = [1, 1]} : vector<32x96xf32> to vector<4x96xf32>
    %cst_13 = arith.constant dense<0.000000e+00> : vector<4x96xf32>
    %35 = tpu.matmul %33, %6, %cst_13 {dimension_numbers = #tpu.dot_dimension_numbers<[1], [0], [0], [1], [0, 0, 1, 1], [], []>} : vector<4x32xf32>, vector<32x96xf32>, vector<4x96xf32> -> vector<4x96xf32>
    %36 = vector.extract_strided_slice %34 {offsets = [0, 0], sizes = [4, 64], strides = [1, 1]} : vector<4x96xf32> to vector<4x64xf32>
    %37 = vector.extract_strided_slice %35 {offsets = [0, 0], sizes = [4, 64], strides = [1, 1]} : vector<4x96xf32> to vector<4x64xf32>
    %38 = arith.addf %36, %37 : vector<4x64xf32>
    %39 = arith.negf %38 : vector<4x64xf32>
    %40 = math.exp %39 : vector<4x64xf32>
    %cst_14 = arith.constant 1.000000e+00 : f32
    %41 = vector.broadcast %cst_14 : f32 to vector<4x64xf32>
    %42 = arith.addf %41, %40 : vector<4x64xf32>
    %43 = arith.divf %41, %42 : vector<4x64xf32>
    %44 = vector.extract_strided_slice %43 {offsets = [0, 0], sizes = [4, 32], strides = [1, 1]} : vector<4x64xf32> to vector<4x32xf32>
    %45 = vector.extract_strided_slice %43 {offsets = [0, 32], sizes = [4, 32], strides = [1, 1]} : vector<4x64xf32> to vector<4x32xf32>
    %46 = vector.extract_strided_slice %34 {offsets = [0, 64], sizes = [4, 32], strides = [1, 1]} : vector<4x96xf32> to vector<4x32xf32>
    %47 = vector.extract_strided_slice %35 {offsets = [0, 64], sizes = [4, 32], strides = [1, 1]} : vector<4x96xf32> to vector<4x32xf32>
    %48 = arith.addf %47, %9 : vector<4x32xf32>
    %49 = arith.mulf %44, %48 : vector<4x32xf32>
    %50 = arith.addf %46, %49 : vector<4x32xf32>
    %51 = math.tanh %50 : vector<4x32xf32>
    %cst_15 = arith.constant 1.000000e+00 : f32
    %52 = vector.broadcast %cst_15 : f32 to vector<4x32xf32>
    %53 = arith.subf %52, %45 : vector<4x32xf32>
    %54 = arith.mulf %53, %51 : vector<4x32xf32>
    %55 = arith.mulf %45, %33 : vector<4x32xf32>
    %56 = arith.addf %54, %55 : vector<4x32xf32>
    %57 = vector.extract_strided_slice %5 {offsets = [8, 0], sizes = [4, 96], strides = [1, 1]} : vector<32x96xf32> to vector<4x96xf32>
    %cst_16 = arith.constant dense<0.000000e+00> : vector<4x96xf32>
    %58 = tpu.matmul %56, %6, %cst_16 {dimension_numbers = #tpu.dot_dimension_numbers<[1], [0], [0], [1], [0, 0, 1, 1], [], []>} : vector<4x32xf32>, vector<32x96xf32>, vector<4x96xf32> -> vector<4x96xf32>
    %59 = vector.extract_strided_slice %57 {offsets = [0, 0], sizes = [4, 64], strides = [1, 1]} : vector<4x96xf32> to vector<4x64xf32>
    %60 = vector.extract_strided_slice %58 {offsets = [0, 0], sizes = [4, 64], strides = [1, 1]} : vector<4x96xf32> to vector<4x64xf32>
    %61 = arith.addf %59, %60 : vector<4x64xf32>
    %62 = arith.negf %61 : vector<4x64xf32>
    %63 = math.exp %62 : vector<4x64xf32>
    %cst_17 = arith.constant 1.000000e+00 : f32
    %64 = vector.broadcast %cst_17 : f32 to vector<4x64xf32>
    %65 = arith.addf %64, %63 : vector<4x64xf32>
    %66 = arith.divf %64, %65 : vector<4x64xf32>
    %67 = vector.extract_strided_slice %66 {offsets = [0, 0], sizes = [4, 32], strides = [1, 1]} : vector<4x64xf32> to vector<4x32xf32>
    %68 = vector.extract_strided_slice %66 {offsets = [0, 32], sizes = [4, 32], strides = [1, 1]} : vector<4x64xf32> to vector<4x32xf32>
    %69 = vector.extract_strided_slice %57 {offsets = [0, 64], sizes = [4, 32], strides = [1, 1]} : vector<4x96xf32> to vector<4x32xf32>
    %70 = vector.extract_strided_slice %58 {offsets = [0, 64], sizes = [4, 32], strides = [1, 1]} : vector<4x96xf32> to vector<4x32xf32>
    %71 = arith.addf %70, %9 : vector<4x32xf32>
    %72 = arith.mulf %67, %71 : vector<4x32xf32>
    %73 = arith.addf %69, %72 : vector<4x32xf32>
    %74 = math.tanh %73 : vector<4x32xf32>
    %cst_18 = arith.constant 1.000000e+00 : f32
    %75 = vector.broadcast %cst_18 : f32 to vector<4x32xf32>
    %76 = arith.subf %75, %68 : vector<4x32xf32>
    %77 = arith.mulf %76, %74 : vector<4x32xf32>
    %78 = arith.mulf %68, %56 : vector<4x32xf32>
    %79 = arith.addf %77, %78 : vector<4x32xf32>
    %80 = vector.extract_strided_slice %5 {offsets = [12, 0], sizes = [4, 96], strides = [1, 1]} : vector<32x96xf32> to vector<4x96xf32>
    %cst_19 = arith.constant dense<0.000000e+00> : vector<4x96xf32>
    %81 = tpu.matmul %79, %6, %cst_19 {dimension_numbers = #tpu.dot_dimension_numbers<[1], [0], [0], [1], [0, 0, 1, 1], [], []>} : vector<4x32xf32>, vector<32x96xf32>, vector<4x96xf32> -> vector<4x96xf32>
    %82 = vector.extract_strided_slice %80 {offsets = [0, 0], sizes = [4, 64], strides = [1, 1]} : vector<4x96xf32> to vector<4x64xf32>
    %83 = vector.extract_strided_slice %81 {offsets = [0, 0], sizes = [4, 64], strides = [1, 1]} : vector<4x96xf32> to vector<4x64xf32>
    %84 = arith.addf %82, %83 : vector<4x64xf32>
    %85 = arith.negf %84 : vector<4x64xf32>
    %86 = math.exp %85 : vector<4x64xf32>
    %cst_20 = arith.constant 1.000000e+00 : f32
    %87 = vector.broadcast %cst_20 : f32 to vector<4x64xf32>
    %88 = arith.addf %87, %86 : vector<4x64xf32>
    %89 = arith.divf %87, %88 : vector<4x64xf32>
    %90 = vector.extract_strided_slice %89 {offsets = [0, 0], sizes = [4, 32], strides = [1, 1]} : vector<4x64xf32> to vector<4x32xf32>
    %91 = vector.extract_strided_slice %89 {offsets = [0, 32], sizes = [4, 32], strides = [1, 1]} : vector<4x64xf32> to vector<4x32xf32>
    %92 = vector.extract_strided_slice %80 {offsets = [0, 64], sizes = [4, 32], strides = [1, 1]} : vector<4x96xf32> to vector<4x32xf32>
    %93 = vector.extract_strided_slice %81 {offsets = [0, 64], sizes = [4, 32], strides = [1, 1]} : vector<4x96xf32> to vector<4x32xf32>
    %94 = arith.addf %93, %9 : vector<4x32xf32>
    %95 = arith.mulf %90, %94 : vector<4x32xf32>
    %96 = arith.addf %92, %95 : vector<4x32xf32>
    %97 = math.tanh %96 : vector<4x32xf32>
    %cst_21 = arith.constant 1.000000e+00 : f32
    %98 = vector.broadcast %cst_21 : f32 to vector<4x32xf32>
    %99 = arith.subf %98, %91 : vector<4x32xf32>
    %100 = arith.mulf %99, %97 : vector<4x32xf32>
    %101 = arith.mulf %91, %79 : vector<4x32xf32>
    %102 = arith.addf %100, %101 : vector<4x32xf32>
    %103 = vector.extract_strided_slice %5 {offsets = [16, 0], sizes = [4, 96], strides = [1, 1]} : vector<32x96xf32> to vector<4x96xf32>
    %cst_22 = arith.constant dense<0.000000e+00> : vector<4x96xf32>
    %104 = tpu.matmul %102, %6, %cst_22 {dimension_numbers = #tpu.dot_dimension_numbers<[1], [0], [0], [1], [0, 0, 1, 1], [], []>} : vector<4x32xf32>, vector<32x96xf32>, vector<4x96xf32> -> vector<4x96xf32>
    %105 = vector.extract_strided_slice %103 {offsets = [0, 0], sizes = [4, 64], strides = [1, 1]} : vector<4x96xf32> to vector<4x64xf32>
    %106 = vector.extract_strided_slice %104 {offsets = [0, 0], sizes = [4, 64], strides = [1, 1]} : vector<4x96xf32> to vector<4x64xf32>
    %107 = arith.addf %105, %106 : vector<4x64xf32>
    %108 = arith.negf %107 : vector<4x64xf32>
    %109 = math.exp %108 : vector<4x64xf32>
    %cst_23 = arith.constant 1.000000e+00 : f32
    %110 = vector.broadcast %cst_23 : f32 to vector<4x64xf32>
    %111 = arith.addf %110, %109 : vector<4x64xf32>
    %112 = arith.divf %110, %111 : vector<4x64xf32>
    %113 = vector.extract_strided_slice %112 {offsets = [0, 0], sizes = [4, 32], strides = [1, 1]} : vector<4x64xf32> to vector<4x32xf32>
    %114 = vector.extract_strided_slice %112 {offsets = [0, 32], sizes = [4, 32], strides = [1, 1]} : vector<4x64xf32> to vector<4x32xf32>
    %115 = vector.extract_strided_slice %103 {offsets = [0, 64], sizes = [4, 32], strides = [1, 1]} : vector<4x96xf32> to vector<4x32xf32>
    %116 = vector.extract_strided_slice %104 {offsets = [0, 64], sizes = [4, 32], strides = [1, 1]} : vector<4x96xf32> to vector<4x32xf32>
    %117 = arith.addf %116, %9 : vector<4x32xf32>
    %118 = arith.mulf %113, %117 : vector<4x32xf32>
    %119 = arith.addf %115, %118 : vector<4x32xf32>
    %120 = math.tanh %119 : vector<4x32xf32>
    %cst_24 = arith.constant 1.000000e+00 : f32
    %121 = vector.broadcast %cst_24 : f32 to vector<4x32xf32>
    %122 = arith.subf %121, %114 : vector<4x32xf32>
    %123 = arith.mulf %122, %120 : vector<4x32xf32>
    %124 = arith.mulf %114, %102 : vector<4x32xf32>
    %125 = arith.addf %123, %124 : vector<4x32xf32>
    %126 = vector.extract_strided_slice %5 {offsets = [20, 0], sizes = [4, 96], strides = [1, 1]} : vector<32x96xf32> to vector<4x96xf32>
    %cst_25 = arith.constant dense<0.000000e+00> : vector<4x96xf32>
    %127 = tpu.matmul %125, %6, %cst_25 {dimension_numbers = #tpu.dot_dimension_numbers<[1], [0], [0], [1], [0, 0, 1, 1], [], []>} : vector<4x32xf32>, vector<32x96xf32>, vector<4x96xf32> -> vector<4x96xf32>
    %128 = vector.extract_strided_slice %126 {offsets = [0, 0], sizes = [4, 64], strides = [1, 1]} : vector<4x96xf32> to vector<4x64xf32>
    %129 = vector.extract_strided_slice %127 {offsets = [0, 0], sizes = [4, 64], strides = [1, 1]} : vector<4x96xf32> to vector<4x64xf32>
    %130 = arith.addf %128, %129 : vector<4x64xf32>
    %131 = arith.negf %130 : vector<4x64xf32>
    %132 = math.exp %131 : vector<4x64xf32>
    %cst_26 = arith.constant 1.000000e+00 : f32
    %133 = vector.broadcast %cst_26 : f32 to vector<4x64xf32>
    %134 = arith.addf %133, %132 : vector<4x64xf32>
    %135 = arith.divf %133, %134 : vector<4x64xf32>
    %136 = vector.extract_strided_slice %135 {offsets = [0, 0], sizes = [4, 32], strides = [1, 1]} : vector<4x64xf32> to vector<4x32xf32>
    %137 = vector.extract_strided_slice %135 {offsets = [0, 32], sizes = [4, 32], strides = [1, 1]} : vector<4x64xf32> to vector<4x32xf32>
    %138 = vector.extract_strided_slice %126 {offsets = [0, 64], sizes = [4, 32], strides = [1, 1]} : vector<4x96xf32> to vector<4x32xf32>
    %139 = vector.extract_strided_slice %127 {offsets = [0, 64], sizes = [4, 32], strides = [1, 1]} : vector<4x96xf32> to vector<4x32xf32>
    %140 = arith.addf %139, %9 : vector<4x32xf32>
    %141 = arith.mulf %136, %140 : vector<4x32xf32>
    %142 = arith.addf %138, %141 : vector<4x32xf32>
    %143 = math.tanh %142 : vector<4x32xf32>
    %cst_27 = arith.constant 1.000000e+00 : f32
    %144 = vector.broadcast %cst_27 : f32 to vector<4x32xf32>
    %145 = arith.subf %144, %137 : vector<4x32xf32>
    %146 = arith.mulf %145, %143 : vector<4x32xf32>
    %147 = arith.mulf %137, %125 : vector<4x32xf32>
    %148 = arith.addf %146, %147 : vector<4x32xf32>
    %149 = vector.extract_strided_slice %5 {offsets = [24, 0], sizes = [4, 96], strides = [1, 1]} : vector<32x96xf32> to vector<4x96xf32>
    %cst_28 = arith.constant dense<0.000000e+00> : vector<4x96xf32>
    %150 = tpu.matmul %148, %6, %cst_28 {dimension_numbers = #tpu.dot_dimension_numbers<[1], [0], [0], [1], [0, 0, 1, 1], [], []>} : vector<4x32xf32>, vector<32x96xf32>, vector<4x96xf32> -> vector<4x96xf32>
    %151 = vector.extract_strided_slice %149 {offsets = [0, 0], sizes = [4, 64], strides = [1, 1]} : vector<4x96xf32> to vector<4x64xf32>
    %152 = vector.extract_strided_slice %150 {offsets = [0, 0], sizes = [4, 64], strides = [1, 1]} : vector<4x96xf32> to vector<4x64xf32>
    %153 = arith.addf %151, %152 : vector<4x64xf32>
    %154 = arith.negf %153 : vector<4x64xf32>
    %155 = math.exp %154 : vector<4x64xf32>
    %cst_29 = arith.constant 1.000000e+00 : f32
    %156 = vector.broadcast %cst_29 : f32 to vector<4x64xf32>
    %157 = arith.addf %156, %155 : vector<4x64xf32>
    %158 = arith.divf %156, %157 : vector<4x64xf32>
    %159 = vector.extract_strided_slice %158 {offsets = [0, 0], sizes = [4, 32], strides = [1, 1]} : vector<4x64xf32> to vector<4x32xf32>
    %160 = vector.extract_strided_slice %158 {offsets = [0, 32], sizes = [4, 32], strides = [1, 1]} : vector<4x64xf32> to vector<4x32xf32>
    %161 = vector.extract_strided_slice %149 {offsets = [0, 64], sizes = [4, 32], strides = [1, 1]} : vector<4x96xf32> to vector<4x32xf32>
    %162 = vector.extract_strided_slice %150 {offsets = [0, 64], sizes = [4, 32], strides = [1, 1]} : vector<4x96xf32> to vector<4x32xf32>
    %163 = arith.addf %162, %9 : vector<4x32xf32>
    %164 = arith.mulf %159, %163 : vector<4x32xf32>
    %165 = arith.addf %161, %164 : vector<4x32xf32>
    %166 = math.tanh %165 : vector<4x32xf32>
    %cst_30 = arith.constant 1.000000e+00 : f32
    %167 = vector.broadcast %cst_30 : f32 to vector<4x32xf32>
    %168 = arith.subf %167, %160 : vector<4x32xf32>
    %169 = arith.mulf %168, %166 : vector<4x32xf32>
    %170 = arith.mulf %160, %148 : vector<4x32xf32>
    %171 = arith.addf %169, %170 : vector<4x32xf32>
    %172 = vector.extract_strided_slice %5 {offsets = [28, 0], sizes = [4, 96], strides = [1, 1]} : vector<32x96xf32> to vector<4x96xf32>
    %cst_31 = arith.constant dense<0.000000e+00> : vector<4x96xf32>
    %173 = tpu.matmul %171, %6, %cst_31 {dimension_numbers = #tpu.dot_dimension_numbers<[1], [0], [0], [1], [0, 0, 1, 1], [], []>} : vector<4x32xf32>, vector<32x96xf32>, vector<4x96xf32> -> vector<4x96xf32>
    %174 = vector.extract_strided_slice %172 {offsets = [0, 0], sizes = [4, 64], strides = [1, 1]} : vector<4x96xf32> to vector<4x64xf32>
    %175 = vector.extract_strided_slice %173 {offsets = [0, 0], sizes = [4, 64], strides = [1, 1]} : vector<4x96xf32> to vector<4x64xf32>
    %176 = arith.addf %174, %175 : vector<4x64xf32>
    %177 = arith.negf %176 : vector<4x64xf32>
    %178 = math.exp %177 : vector<4x64xf32>
    %cst_32 = arith.constant 1.000000e+00 : f32
    %179 = vector.broadcast %cst_32 : f32 to vector<4x64xf32>
    %180 = arith.addf %179, %178 : vector<4x64xf32>
    %181 = arith.divf %179, %180 : vector<4x64xf32>
    %182 = vector.extract_strided_slice %181 {offsets = [0, 0], sizes = [4, 32], strides = [1, 1]} : vector<4x64xf32> to vector<4x32xf32>
    %183 = vector.extract_strided_slice %181 {offsets = [0, 32], sizes = [4, 32], strides = [1, 1]} : vector<4x64xf32> to vector<4x32xf32>
    %184 = vector.extract_strided_slice %172 {offsets = [0, 64], sizes = [4, 32], strides = [1, 1]} : vector<4x96xf32> to vector<4x32xf32>
    %185 = vector.extract_strided_slice %173 {offsets = [0, 64], sizes = [4, 32], strides = [1, 1]} : vector<4x96xf32> to vector<4x32xf32>
    %186 = arith.addf %185, %9 : vector<4x32xf32>
    %187 = arith.mulf %182, %186 : vector<4x32xf32>
    %188 = arith.addf %184, %187 : vector<4x32xf32>
    %189 = math.tanh %188 : vector<4x32xf32>
    %cst_33 = arith.constant 1.000000e+00 : f32
    %190 = vector.broadcast %cst_33 : f32 to vector<4x32xf32>
    %191 = arith.subf %190, %183 : vector<4x32xf32>
    %192 = arith.mulf %191, %189 : vector<4x32xf32>
    %193 = arith.mulf %183, %171 : vector<4x32xf32>
    %194 = arith.addf %192, %193 : vector<4x32xf32>
    %c0_34 = arith.constant 0 : index
    %c0_35 = arith.constant 0 : index
    %195 = vector.load %arg5[%c0_34, %c0_35] : memref<32x16xf32, #tpu.memory_space<vmem>>, vector<32x16xf32>
    %cst_36 = arith.constant dense<0.000000e+00> : vector<4x16xf32>
    %196 = tpu.matmul %194, %195, %cst_36 {dimension_numbers = #tpu.dot_dimension_numbers<[1], [0], [0], [1], [0, 0, 1, 1], [], []>} : vector<4x32xf32>, vector<32x16xf32>, vector<4x16xf32> -> vector<4x16xf32>
    %c0_37 = arith.constant 0 : index
    %c0_38 = arith.constant 0 : index
    %197 = vector.load %arg6[%c0_37, %c0_38] : memref<1x16xf32, #tpu.memory_space<vmem>>, vector<1x16xf32>
    %198 = vector.broadcast %197 : vector<1x16xf32> to vector<4x16xf32>
    %199 = arith.addf %196, %198 : vector<4x16xf32>
    %200 = arith.negf %199 : vector<4x16xf32>
    %201 = math.exp %200 : vector<4x16xf32>
    %cst_39 = arith.constant 1.000000e+00 : f32
    %202 = vector.broadcast %cst_39 : f32 to vector<4x16xf32>
    %203 = arith.addf %202, %201 : vector<4x16xf32>
    %204 = arith.divf %202, %203 : vector<4x16xf32>
    %c0_40 = arith.constant 0 : index
    %c0_41 = arith.constant 0 : index
    %205 = vector.load %arg7[%c0_40, %c0_41] : memref<4x16xf32, #tpu.memory_space<vmem>>, vector<4x16xf32>
    tpu.vector_store %arg7[%c0_40, %c0_41], %204 {strides = array<i32>} : memref<4x16xf32, #tpu.memory_space<vmem>>, vector<4x16xf32>,
    return
  }
}

</mosaic_0001>

<bundles_post_ra>
// kernel: tpu_custom_call.1
= control target key start
LH: loop header
LB: loop body
LE: loop exit
PB: predicated region body
PF: predicated region fallthrough
CT: control target
= control target key end

     0   :  { %12 = vsyncpa [#allocation3], 0  ;;  %s1768_s0 = inlined_call_operand.vmem [shape: f32[32,32], index: 0, kind: input, shape index: {}]   ;;  %s1769_s1 = inlined_call_operand.hbm [shape: f32[32,96], index: 1, kind: input, shape index: {}]   ;;  %s1770_s2 = inlined_call_operand.hbm [shape: f32[32,96], index: 2, kind: input, shape index: {}]   ;;  %s1771_s3 = inlined_call_operand.vmem [shape: f32[1,96], index: 3, kind: input, shape index: {}]   ;;  %s1772_s4 = inlined_call_operand.vmem [shape: f32[1,32], index: 4, kind: input, shape index: {}]   ;;  %s1773_s5 = inlined_call_operand.vmem [shape: f32[32,16], index: 5, kind: input, shape index: {}]   ;;  %s1774_s6 = inlined_call_operand.vmem [shape: f32[1,16], index: 6, kind: input, shape index: {}]   ;;  %s1775_s7 = inlined_call_operand.hbm [shape: f32[4,16], index: 7, kind: output, shape index: {}]  }
   0x1   :  { %13 = vsyncpa [#allocation6], 0 }
   0x2   :  { %14 = vsyncpa [#allocation4], 0  ;;  %s1522_s24 = smov [#allocation2]   ;;  %s1450_s28 = scalar_lea.hbm %s1769_s1, 512 }
   0x3   :  { %s22_s25 = sshll.u32 %s1522_s24, 4  ;;  %p1451_p0 = scmp.ne.s32.totalorder %s1769_s1, %s1450_s28  ;;  %s23_s25 = int_to_ptr.vmem [resolvable:$true] %s22_s25 }
   0x4   :  { %p1454_p1 = scmp.lt.u32.totalorder %s1450_s28, %s1769_s1 }
   0x6   :  { %p1456_p2 = pnand %p1454_p1, %p1451_p0 }
   0x8   :  { %1459 = shalt.err (!%p1456_p2)
}
   0x9   :  { %s1460_s10 = scalar_lea.vmem %s23_s25, 512  ;;  %p1465_p4 = scmp.lt.s32.totalorder %s23_s25, %s23_s25 }
   0xa   :  { %p1461_p3 = scmp.ne.s32.totalorder %s23_s25, %s1460_s10  ;;  %p1466_p5 = scmp.lt.s32.totalorder %s1460_s10, %s1460_s10 }
   0xc   :  { %p1467_p6 = por %p1466_p5, %p1465_p4 }
   0xe   :  { %p1468_p7 = pnand %p1467_p6, %p1461_p3 }
  0x10   :  { %1471 = shalt.err (!%p1468_p7)
}
  0x11   :  { %s1523_s11 = smov 128   ;;  %s1524_s12 = smov 8  }
  0x12   :  { %28 = dma.hbm_to_vmem [thread:$0]  %s1769_s1, 512, %s23_s25, [#allocation3], %s1523_s11, %s1523_s11, %s1524_s12  }
  0x13   :  { %s1525_s15 = smov [#allocation5]   ;;  %s1472_s19 = scalar_lea.hbm %s1770_s2, 512 }
  0x14   :  { %s34_s16 = sshll.u32 %s1525_s15, 4  ;;  %p1473_p8 = scmp.ne.s32.totalorder %s1770_s2, %s1472_s19  ;;  %s35_s16 = int_to_ptr.vmem [resolvable:$true] %s34_s16 }
  0x15   :  { %p1476_p9 = scmp.lt.u32.totalorder %s1472_s19, %s1770_s2 }
  0x17   :  { %p1478_p10 = pnand %p1476_p9, %p1473_p8 }
  0x19   :  { %1481 = shalt.err (!%p1478_p10)
}
  0x1a   :  { %s1482_s24 = scalar_lea.vmem %s35_s16, 512  ;;  %p1487_p12 = scmp.lt.s32.totalorder %s35_s16, %s35_s16 }
  0x1b   :  { %p1483_p11 = scmp.ne.s32.totalorder %s35_s16, %s1482_s24  ;;  %p1488_p13 = scmp.lt.s32.totalorder %s1482_s24, %s1482_s24 }
  0x1d   :  { %p1489_p0 = por %p1488_p13, %p1487_p12 }
  0x1f   :  { %p1490_p1 = pnand %p1489_p0, %p1483_p11 }
  0x21   :  { %1493 = shalt.err (!%p1490_p1)
}
  0x22   :  { %40 = dma.hbm_to_vmem [thread:$0]  %s1770_s2, 512, %s35_s16, [#allocation6], %s1523_s11, %s1523_s11, %s1524_s12  }
  0x23   :  { %1516 = dma.done.wait [#allocation3], 512  }
  0x24   :  { %1517 = vsyncadd [#allocation3], 4294966784 }
  0x25   :  { %1518 = dma.done.wait [#allocation6], 512  }
  0x26   :  { %1519 = vsyncadd [#allocation6], 4294966784  ;;  %v1526_v0 = vmov 0.0|0.0   ;;  %vm1527_vm0 = vmmov 0   ;;  %v1528_v1 = vmov 0.0   ;;  %v59_v2 = vld [vmem:[#allocation2] sm:$0xff] }
  0x27   :  { %1334 = vmatprep.subr.bf16.mxu1 %v1526_v0  ;;  %1235 = vmatprep.mubr.msk.f32.mxu1 %vm1527_vm0, %v1528_v1  ;;  %v60_v3 = vld [vmem:[#allocation2 + $0x8] sm:$0xff]  ;;  %v168_v4 = vld [vmem:[#allocation5] sm:$0xff]  ;;  %vm70_vm1 = vcmask 261120   ;;  %v61_v7 = vld [vmem:[#allocation2 + $0x10] sm:$0xff]  ;;  %s1529_s29 = smov 64   ;;  %s1530_s13 = smov 96  }
  0x28   :  { %v1326_v5 = vpack.c.bf16 %v60_v3, %v59_v2  ;;  %v169_v6 = vld [vmem:[#allocation5 + $0x8] sm:$0xff]  ;;  %v62_v8 = vld [vmem:[#allocation2 + $0x18] sm:$0xff]  ;;  %v170_v11 = vld [vmem:[#allocation5 + $0x10] sm:$0xff]  ;;  %s1531_s22 = smov [#allocation7]   ;;  %vm1118_vm2 = vcmask 125952  }
  0x29   :  { %v1599_v9 = vpack.c.bf16 %v169_v6, %v168_v4  ;;  %v1330_v10 = vpack.c.bf16 %v62_v8, %v61_v7  ;;  %v171_v12 = vld [vmem:[#allocation5 + $0x18] sm:$0xff]  ;;  %v55_v13 = vld [vmem:[%s1768_s0] sm:$0xff]  ;;  %v56_v16 = vld [vmem:[%s1768_s0 + $0x8] sm:$0xff]  ;;  %s1126_s23 = sshll.u32 %s1531_s22, 4  ;;  %s1127_s23 = int_to_ptr.vmem [resolvable:$true] %s1126_s23 }
  0x2a   :  { %1327 = vmatprep.subr.bf16.mxu0 %v1326_v5  ;;  %1221 = vmatprep.mubr.msk.f32.mxu0 %vm70_vm1, %v55_v13  ;;  %v1141_v14 = vld [vmem:[%s1772_s4] ss:$0 sm:$0xff]  ;;  %v1609_v15 = vpack.c.bf16 %v171_v12, %v170_v11  ;;  %v57_v34 = vld [vmem:[%s1768_s0 + $0x10] sm:$0xff]  ;;  %v58_v35 = vld [vmem:[%s1768_s0 + $0x18] sm:$0xff]  ;;  %s1494_s24 = scalar_lea.vmem %s1127_s23, 64  ;;  %p1499_p3 = scmp.lt.s32.totalorder %s1127_s23, %s1127_s23 }
  0x2b   :  { %1336 = vmatpush3.bf16.msra.mxu1 %v1599_v9  ;;  %1329 = vmatpush3.bf16.msra.mxu0 %v1326_v5  ;;  %v1640_v23 = vld [vmem:[%s1771_s3] ss:$0 sm:$0xff]  ;;  %p1495_p2 = scmp.ne.s32.totalorder %s1127_s23, %s1494_s24  ;;  %p1500_p4 = scmp.lt.s32.totalorder %s1494_s24, %s1494_s24 }
  0x2c   :  { %1337 = vmatprep.subr.bf16.mxu1 %v1526_v0  ;;  %1331 = vmatprep.subr.bf16.mxu0 %v1330_v10 }
  0x2d   :  { %258 = vrot.lane.b32.xlu0 %v1141_v14, %s1529_s29  ;;  %p1501_p5 = por %p1500_p4, %p1499_p3 }
  0x2f   :  { %1339 = vmatpush3.bf16.msra.mxu1 %v1609_v15  ;;  %1333 = vmatpush3.bf16.msra.mxu0 %v1330_v10  ;;  %p1502_p6 = pnand %p1501_p5, %p1495_p2 }
  0x30   :  { %1340 = vmatprep.subr.bf16.mxu0 %v1526_v0  ;;  %1346 = vmatprep.subr.bf16.mxu1 %v1526_v0 }
  0x32   :  { %1236 = vmatmul.mubr.f32.vlgmr.msra.gmra.mrb[0].mxu1 %v1528_v1  ;;  %1222 = vmatmul.mubr.msk.f32.vlgmr.msra.gmra.mrb[0].mxu0 %vm70_vm1, %v56_v16 }
  0x33   :  { %1342 = vmatpush3.bf16.msra.mxu0 %v1599_v9  ;;  %1348 = vmatpush3.bf16.msra.mxu1 %v1599_v9 }
  0x34   :  { %1343 = vmatprep.subr.bf16.mxu0 %v1526_v0  ;;  %1349 = vmatprep.subr.bf16.mxu1 %v1526_v0 }
  0x35   :  { %1257 = vmatprep.mubr.msk.f32.mxu1 %vm1527_vm0, %v1528_v1  ;;  %1224 = vmatprep.mubr.msk.f32.mxu0 %vm70_vm1, %v57_v34 }
  0x36   :  { %1225 = vmatmul.mubr.msk.f32.gmra.mrb[2].mxu0 %vm70_vm1, %v58_v35 }
  0x37   :  { %1345 = vmatpush3.bf16.msra.mxu0 %v1609_v15  ;;  %1351 = vmatpush3.bf16.msra.mxu1 %v1609_v15 }
  0x38   :  { %1352 = vmatprep.subr.bf16.mxu0 %v1526_v0  ;;  %1358 = vmatprep.subr.bf16.mxu1 %v1526_v0 }
  0x39   :  { %1246 = vmatprep.mubr.msk.f32.mxu0 %vm1527_vm0, %v1528_v1 }
  0x9f   :  { %v1631_v17 = vpop.permute.xlu0 %258 }
 0x105   :  { %v247_v18 = vpop.f32.mrb[0].mxu1  ;;  %v1633_v19 = vpop.f32.mrb[0].mxu0 }
 0x106   :  { %v261_v20 = vadd.f32 %v1631_v17, %v247_v18  ;;  %v1237_v21 = vpop.f32.mrb[1].mxu1  ;;  %v149_v22 = vpop.f32.mrb[1].mxu0  ;;  %v155_v10 = vadd.f32 %v1633_v19, %v1640_v23 }
 0x107   :  { %v150_v24 = vadd.f32 %v1640_v23, %v149_v22 }
 0x108   :  { %263 = vrot.lane.b32.xlu0 %v261_v20, %s1529_s29 }
 0x109   :  { %v251_v25 = vadd.f32 %v247_v18, %v150_v24  ;;  %v1656_v42 = vpop.f32.mrb[2].mxu0 }
 0x10a   :  { %v1658_v43 = vpop.f32.mrb[3].mxu0 }
 0x10b   :  { %v1142_v26 = vmul.f32 -1.442695, %v251_v25 }
 0x10d   :  { %1398 = vpow2.f32 %v1142_v26 }
 0x117   :  { %v1399_v27 = vpop.eup %1398 }
 0x118   :  { %v255_v28 = vadd.f32 1.0, %v1399_v27 }
 0x11a   :  { %1400 = vrcp.f32 %v255_v28 }
 0x124   :  { %v1401_v29 = vpop.eup %1400 }
 0x125   :  { %v273_v37 = vsub.f32 1.0, %v1401_v29  ;;  %v279_v39 = vmul.f32 0.0, %v1401_v29 }
 0x17a   :  { %v264_v30 = vpop.permute.xlu0 %263 }
 0x17b   :  { %v266_v31 = vmul.f32 %v1401_v29, %v264_v30 }
 0x17d   :  { %268 = vrot.lane.b32.xlu1 %v266_v31, %s1529_s29 }
 0x1ef   :  { %v269_v32 = vpop.permute.xlu1 %268 }
 0x1f0   :  { %v271_v33 = vadd.f32 %v269_v32, %v150_v24 }
 0x1f2   :  { %1402 = vtanh.f32 %v271_v33 }
 0x1fc   :  { %v1403_v36 = vpop.eup %1402 }
 0x1fd   :  { %275 = vrot.lane.b32.xlu1 %v1403_v36, %s1530_s13 }
 0x26f   :  { %v276_v38 = vpop.permute.xlu1 %275 }
 0x270   :  { %v278_v40 = vmul.f32 %v276_v38, %v273_v37 }
 0x272   :  { %v280_v41 = vadd.f32 %v279_v39, %v278_v40 }
 0x274   :  { %282 = vrot.lane.b32.xlu0 %v280_v41, %s1530_s13  ;;  %v385_v60 = vrot.slane %v280_v41, 4 }
 0x2e6   :  { %v283_v44 = vpop.permute.xlu0 %282 }
 0x2e7   :  { %1247 = vmatmul.mubr.msk.f32.vlgmr.msra.gmra.mrb[4].mxu0 %vm70_vm1, %v283_v44 }
 0x2e8   :  { %1354 = vmatpush3.bf16.msra.mxu0 %v1599_v9  ;;  %1268 = vmatprep.mubr.msk.f32.mxu0 %vm1527_vm0, %v1528_v1 }
 0x2e9   :  { %1355 = vmatprep.subr.bf16.mxu0 %v1526_v0 }
 0x2ec   :  { %1357 = vmatpush3.bf16.msra.mxu0 %v1609_v15 }
 0x2ed   :  { %1364 = vmatprep.subr.bf16.mxu0 %v1526_v0 }
 0x3ba   :  { %v352_v45 = vpop.f32.mrb[4].mxu0 }
 0x3bb   :  { %v366_v46 = vadd.f32 %v352_v45, %v1631_v17  ;;  %v1248_v47 = vpop.f32.mrb[5].mxu0  ;;  %v357_v49 = vrot.slane %v352_v45, 4 }
 0x3bd   :  { %v368_v48 = vrot.slane %v366_v46, 4  ;;  %v359_v50 = vadd.f32 %v357_v49, %v150_v24 }
 0x3bf   :  { %369 = vrot.lane.b32.xlu1 %v368_v48, %s1529_s29  ;;  %v1144_v51 = vmul.f32 -1.442695, %v359_v50 }
 0x3c1   :  { %1404 = vpow2.f32 %v1144_v51 }
 0x3cb   :  { %v1405_v52 = vpop.eup %1404 }
 0x3cc   :  { %v363_v53 = vadd.f32 1.0, %v1405_v52 }
 0x3ce   :  { %1406 = vrcp.f32 %v363_v53 }
 0x3d8   :  { %v1407_v54 = vpop.eup %1406 }
 0x3d9   :  { %v379_v61 = vsub.f32 1.0, %v1407_v54  ;;  %v387_v2 = vmul.f32 %v1407_v54, %v385_v60 }
 0x431   :  { %v370_v55 = vpop.permute.xlu1 %369 }
 0x432   :  { %v372_v56 = vmul.f32 %v1407_v54, %v370_v55 }
 0x434   :  { %374 = vrot.lane.b32.xlu0 %v372_v56, %s1529_s29 }
 0x4a6   :  { %v375_v57 = vpop.permute.xlu0 %374 }
 0x4a7   :  { %v377_v58 = vadd.f32 %v375_v57, %v150_v24 }
 0x4a9   :  { %1408 = vtanh.f32 %v377_v58  ;;  %v160_v58 = vadd.f32 %v1640_v23, %v1658_v43 }
 0x4b3   :  { %v1409_v59 = vpop.eup %1408 }
 0x4b4   :  { %381 = vrot.lane.b32.xlu1 %v1409_v59, %s1530_s13 }
 0x526   :  { %v382_v62 = vpop.permute.xlu1 %381 }
 0x527   :  { %v384_v63 = vmul.f32 %v382_v62, %v379_v61 }
 0x529   :  { %v388_v3 = vadd.f32 %v387_v2, %v384_v63 }
 0x52b   :  { %v390_v4 = vrot.slane %v388_v3, 4 }
 0x52d   :  { %391 = vrot.lane.b32.xlu0 %v390_v4, %s1530_s13 }
 0x59f   :  { %v392_v5 = vpop.permute.xlu0 %391 }
 0x5a0   :  { %1258 = vmatmul.mubr.msk.f32.vlgmr.msra.gmra.mrb[2].mxu1 %vm70_vm1, %v392_v5 }
 0x5a1   :  { %1360 = vmatpush3.bf16.msra.mxu1 %v1599_v9  ;;  %1279 = vmatprep.mubr.msk.f32.mxu1 %vm1527_vm0, %v1528_v1 }
 0x5a2   :  { %1361 = vmatprep.subr.bf16.mxu1 %v1526_v0 }
 0x5a5   :  { %1363 = vmatpush3.bf16.msra.mxu1 %v1609_v15 }
 0x5a6   :  { %1370 = vmatprep.subr.bf16.mxu1 %v1526_v0 }
 0x673   :  { %v461_v6 = vpop.f32.mrb[2].mxu1 }
 0x674   :  { %v472_v7 = vadd.f32 %v461_v6, %v1631_v17  ;;  %v1259_v8 = vpop.f32.mrb[3].mxu1  ;;  %v465_v11 = vadd.f32 %v461_v6, %v155_v10 }
 0x676   :  { %474 = vrot.lane.b32.xlu1 %v472_v7, %s1529_s29  ;;  %v1146_v12 = vmul.f32 -1.442695, %v465_v11 }
 0x678   :  { %1410 = vpow2.f32 %v1146_v12 }
 0x682   :  { %v1411_v13 = vpop.eup %1410 }
 0x683   :  { %v469_v14 = vadd.f32 1.0, %v1411_v13 }
 0x685   :  { %1412 = vrcp.f32 %v469_v14 }
 0x68f   :  { %v1413_v16 = vpop.eup %1412 }
 0x690   :  { %v484_v25 = vsub.f32 1.0, %v1413_v16  ;;  %v491_v19 = vmul.f32 %v1413_v16, %v390_v4 }
 0x6e8   :  { %v475_v18 = vpop.permute.xlu1 %474 }
 0x6e9   :  { %v477_v20 = vmul.f32 %v1413_v16, %v475_v18 }
 0x6eb   :  { %479 = vrot.lane.b32.xlu0 %v477_v20, %s1529_s29 }
 0x75d   :  { %v480_v21 = vpop.permute.xlu0 %479 }
 0x75e   :  { %v482_v22 = vadd.f32 %v480_v21, %v155_v10 }
 0x760   :  { %1414 = vtanh.f32 %v482_v22 }
 0x76a   :  { %v1415_v24 = vpop.eup %1414 }
 0x76b   :  { %486 = vrot.lane.b32.xlu1 %v1415_v24, %s1530_s13 }
 0x7dd   :  { %v487_v26 = vpop.permute.xlu1 %486 }
 0x7de   :  { %v489_v27 = vmul.f32 %v487_v26, %v484_v25 }
 0x7e0   :  { %v492_v28 = vadd.f32 %v491_v19, %v489_v27 }
 0x7e2   :  { %494 = vrot.lane.b32.xlu0 %v492_v28, %s1530_s13  ;;  %v597_v47 = vrot.slane %v492_v28, 4 }
 0x854   :  { %v495_v29 = vpop.permute.xlu0 %494 }
 0x855   :  { %1269 = vmatmul.mubr.msk.f32.vlgmr.msra.gmra.mrb[6].mxu0 %vm70_vm1, %v495_v29 }
 0x856   :  { %1366 = vmatpush3.bf16.msra.mxu0 %v1599_v9  ;;  %1290 = vmatprep.mubr.msk.f32.mxu0 %vm1527_vm0, %v1528_v1 }
 0x857   :  { %1367 = vmatprep.subr.bf16.mxu0 %v1526_v0 }
 0x85a   :  { %1369 = vmatpush3.bf16.msra.mxu0 %v1609_v15 }
 0x85b   :  { %1376 = vmatprep.subr.bf16.mxu0 %v1526_v0 }
 0x928   :  { %v564_v30 = vpop.f32.mrb[6].mxu0 }
 0x929   :  { %v578_v31 = vadd.f32 %v564_v30, %v1631_v17  ;;  %v1270_v32 = vpop.f32.mrb[7].mxu0  ;;  %v569_v34 = vrot.slane %v564_v30, 4 }
 0x92b   :  { %v580_v33 = vrot.slane %v578_v31, 4  ;;  %v571_v35 = vadd.f32 %v569_v34, %v155_v10 }
 0x92d   :  { %581 = vrot.lane.b32.xlu1 %v580_v33, %s1529_s29  ;;  %v1148_v36 = vmul.f32 -1.442695, %v571_v35 }
 0x92f   :  { %1416 = vpow2.f32 %v1148_v36 }
 0x939   :  { %v1417_v37 = vpop.eup %1416 }
 0x93a   :  { %v575_v38 = vadd.f32 1.0, %v1417_v37 }
 0x93c   :  { %1418 = vrcp.f32 %v575_v38 }
 0x946   :  { %v1419_v39 = vpop.eup %1418 }
 0x947   :  { %v591_v48 = vsub.f32 1.0, %v1419_v39  ;;  %v599_v51 = vmul.f32 %v1419_v39, %v597_v47 }
 0x99f   :  { %v582_v40 = vpop.permute.xlu1 %581 }
 0x9a0   :  { %v584_v41 = vmul.f32 %v1419_v39, %v582_v40  ;;  %v165_v40 = vadd.f32 %v1656_v42, %v1640_v23 }
 0x9a2   :  { %586 = vrot.lane.b32.xlu0 %v584_v41, %s1529_s29 }
 0xa14   :  { %v587_v44 = vpop.permute.xlu0 %586 }
 0xa15   :  { %v589_v45 = vadd.f32 %v587_v44, %v155_v10 }
 0xa17   :  { %1420 = vtanh.f32 %v589_v45 }
 0xa21   :  { %v1421_v46 = vpop.eup %1420 }
 0xa22   :  { %593 = vrot.lane.b32.xlu1 %v1421_v46, %s1530_s13 }
 0xa94   :  { %v594_v49 = vpop.permute.xlu1 %593 }
 0xa95   :  { %v596_v50 = vmul.f32 %v594_v49, %v591_v48 }
 0xa97   :  { %v600_v52 = vadd.f32 %v599_v51, %v596_v50 }
 0xa99   :  { %v602_v53 = vrot.slane %v600_v52, 4 }
 0xa9b   :  { %603 = vrot.lane.b32.xlu0 %v602_v53, %s1530_s13 }
 0xb0d   :  { %v604_v54 = vpop.permute.xlu0 %603 }
 0xb0e   :  { %1280 = vmatmul.mubr.msk.f32.vlgmr.msra.gmra.mrb[4].mxu1 %vm70_vm1, %v604_v54 }
 0xb0f   :  { %1372 = vmatpush3.bf16.msra.mxu1 %v1599_v9  ;;  %1301 = vmatprep.mubr.msk.f32.mxu1 %vm1527_vm0, %v1528_v1 }
 0xb10   :  { %1373 = vmatprep.subr.bf16.mxu1 %v1526_v0 }
 0xb13   :  { %1375 = vmatpush3.bf16.msra.mxu1 %v1609_v15 }
 0xb14   :  { %1382 = vmatprep.subr.bf16.mxu1 %v1526_v0 }
 0xbe1   :  { %v673_v55 = vpop.f32.mrb[4].mxu1 }
 0xbe2   :  { %v684_v56 = vadd.f32 %v673_v55, %v1631_v17  ;;  %v1281_v57 = vpop.f32.mrb[5].mxu1  ;;  %v677_v59 = vadd.f32 %v673_v55, %v160_v58 }
 0xbe4   :  { %686 = vrot.lane.b32.xlu1 %v684_v56, %s1529_s29  ;;  %v1150_v60 = vmul.f32 -1.442695, %v677_v59 }
 0xbe6   :  { %1422 = vpow2.f32 %v1150_v60 }
 0xbf0   :  { %v1423_v61 = vpop.eup %1422 }
 0xbf1   :  { %v681_v62 = vadd.f32 1.0, %v1423_v61 }
 0xbf3   :  { %1424 = vrcp.f32 %v681_v62 }
 0xbfd   :  { %v1425_v63 = vpop.eup %1424 }
 0xbfe   :  { %v696_v7 = vsub.f32 1.0, %v1425_v63  ;;  %v703_v43 = vmul.f32 %v1425_v63, %v602_v53 }
 0xc56   :  { %v687_v2 = vpop.permute.xlu1 %686 }
 0xc57   :  { %v689_v3 = vmul.f32 %v1425_v63, %v687_v2 }
 0xc59   :  { %691 = vrot.lane.b32.xlu0 %v689_v3, %s1529_s29 }
 0xccb   :  { %v692_v4 = vpop.permute.xlu0 %691 }
 0xccc   :  { %v694_v5 = vadd.f32 %v692_v4, %v160_v58 }
 0xcce   :  { %1426 = vtanh.f32 %v694_v5 }
 0xcd8   :  { %v1427_v6 = vpop.eup %1426 }
 0xcd9   :  { %698 = vrot.lane.b32.xlu1 %v1427_v6, %s1530_s13 }
 0xd4b   :  { %v699_v8 = vpop.permute.xlu1 %698 }
 0xd4c   :  { %v701_v10 = vmul.f32 %v699_v8, %v696_v7  ;;  %v1026_v8 = vld [vmem:[%s1773_s5 + $0x8] sm:$0xff] }
 0xd4e   :  { %v704_v11 = vadd.f32 %v703_v43, %v701_v10  ;;  %v1027_v43 = vld [vmem:[%s1773_s5 + $0x10] sm:$0xff] }
 0xd50   :  { %706 = vrot.lane.b32.xlu0 %v704_v11, %s1530_s13  ;;  %v809_v29 = vrot.slane %v704_v11, 4  ;;  %v1028_v11 = vld [vmem:[%s1773_s5 + $0x18] sm:$0xff] }
 0xdc2   :  { %v707_v12 = vpop.permute.xlu0 %706 }
 0xdc3   :  { %1291 = vmatmul.mubr.msk.f32.vlgmr.msra.gmra.mrb[8].mxu0 %vm70_vm1, %v707_v12  ;;  %v1386_v12 = vpack.c.bf16 %v1028_v11, %v1027_v43 }
 0xdc4   :  { %1378 = vmatpush3.bf16.msra.mxu0 %v1599_v9  ;;  %1312 = vmatprep.mubr.msk.f32.mxu0 %vm1527_vm0, %v1528_v1 }
 0xdc5   :  { %1379 = vmatprep.subr.bf16.mxu0 %v1526_v0 }
 0xdc8   :  { %1381 = vmatpush3.bf16.msra.mxu0 %v1609_v15 }
 0xe96   :  { %v776_v13 = vpop.f32.mrb[8].mxu0 }
 0xe97   :  { %v790_v14 = vadd.f32 %v776_v13, %v1631_v17  ;;  %v1292_v16 = vpop.f32.mrb[9].mxu0  ;;  %v781_v20 = vrot.slane %v776_v13, 4 }
 0xe99   :  { %v792_v18 = vrot.slane %v790_v14, 4  ;;  %v783_v21 = vadd.f32 %v781_v20, %v160_v58 }
 0xe9b   :  { %793 = vrot.lane.b32.xlu1 %v792_v18, %s1529_s29  ;;  %v1152_v22 = vmul.f32 -1.442695, %v783_v21 }
 0xe9d   :  { %1428 = vpow2.f32 %v1152_v22 }
 0xea7   :  { %v1429_v24 = vpop.eup %1428 }
 0xea8   :  { %v787_v9 = vadd.f32 1.0, %v1429_v24 }
 0xeaa   :  { %1430 = vrcp.f32 %v787_v9 }
 0xeb4   :  { %v1431_v25 = vpop.eup %1430 }
 0xeb5   :  { %v803_v30 = vsub.f32 1.0, %v1431_v25  ;;  %v811_v33 = vmul.f32 %v1431_v25, %v809_v29 }
 0xf0d   :  { %v794_v26 = vpop.permute.xlu1 %793 }
 0xf0e   :  { %v796_v19 = vmul.f32 %v1431_v25, %v794_v26 }
 0xf10   :  { %798 = vrot.lane.b32.xlu0 %v796_v19, %s1529_s29 }
 0xf82   :  { %v799_v15 = vpop.permute.xlu0 %798 }
 0xf83   :  { %v801_v27 = vadd.f32 %v799_v15, %v160_v58 }
 0xf85   :  { %1432 = vtanh.f32 %v801_v27 }
 0xf8f   :  { %v1433_v28 = vpop.eup %1432 }
 0xf90   :  { %805 = vrot.lane.b32.xlu1 %v1433_v28, %s1530_s13 }
0x1002   :  { %v806_v31 = vpop.permute.xlu1 %805 }
0x1003   :  { %v808_v32 = vmul.f32 %v806_v31, %v803_v30 }
0x1005   :  { %v812_v34 = vadd.f32 %v811_v33, %v808_v32 }
0x1007   :  { %v814_v35 = vrot.slane %v812_v34, 4 }
0x1009   :  { %815 = vrot.lane.b32.xlu0 %v814_v35, %s1530_s13 }
0x107b   :  { %v816_v36 = vpop.permute.xlu0 %815 }
0x107c   :  { %1302 = vmatmul.mubr.msk.f32.vlgmr.msra.gmra.mrb[6].mxu1 %vm70_vm1, %v816_v36 }
0x107d   :  { %1323 = vmatprep.mubr.msk.f32.mxu1 %vm1527_vm0, %v1528_v1 }
0x114f   :  { %v885_v37 = vpop.f32.mrb[6].mxu1 }
0x1150   :  { %v896_v38 = vadd.f32 %v885_v37, %v1631_v17  ;;  %v1303_v39 = vpop.f32.mrb[7].mxu1  ;;  %v889_v41 = vadd.f32 %v885_v37, %v165_v40 }
0x1152   :  { %898 = vrot.lane.b32.xlu1 %v896_v38, %s1529_s29  ;;  %v1154_v44 = vmul.f32 -1.442695, %v889_v41 }
0x1154   :  { %1434 = vpow2.f32 %v1154_v44 }
0x115e   :  { %v1435_v45 = vpop.eup %1434 }
0x115f   :  { %v893_v46 = vadd.f32 1.0, %v1435_v45 }
0x1161   :  { %1436 = vrcp.f32 %v893_v46 }
0x116b   :  { %v1437_v47 = vpop.eup %1436 }
0x116c   :  { %v908_v52 = vsub.f32 1.0, %v1437_v47  ;;  %v915_v23 = vmul.f32 %v1437_v47, %v814_v35 }
0x11c4   :  { %v899_v48 = vpop.permute.xlu1 %898 }
0x11c5   :  { %v901_v49 = vmul.f32 %v1437_v47, %v899_v48 }
0x11c7   :  { %903 = vrot.lane.b32.xlu0 %v901_v49, %s1529_s29 }
0x1239   :  { %v904_v1 = vpop.permute.xlu0 %903 }
0x123a   :  { %v906_v50 = vadd.f32 %v904_v1, %v165_v40 }
0x123c   :  { %1438 = vtanh.f32 %v906_v50 }
0x1246   :  { %v1439_v51 = vpop.eup %1438 }
0x1247   :  { %910 = vrot.lane.b32.xlu1 %v1439_v51, %s1530_s13 }
0x12b9   :  { %v911_v53 = vpop.permute.xlu1 %910 }
0x12ba   :  { %v913_v42 = vmul.f32 %v911_v53, %v908_v52 }
0x12bc   :  { %v916_v54 = vadd.f32 %v915_v23, %v913_v42 }
0x12be   :  { %918 = vrot.lane.b32.xlu0 %v916_v54, %s1530_s13  ;;  %v1021_v14 = vrot.slane %v916_v54, 4 }
0x1330   :  { %v919_v55 = vpop.permute.xlu0 %918 }
0x1331   :  { %1313 = vmatmul.mubr.msk.f32.vlgmr.msra.gmra.mrb[10].mxu0 %vm70_vm1, %v919_v55 }
0x1404   :  { %v988_v56 = vpop.f32.mrb[10].mxu0 }
0x1405   :  { %v1002_v57 = vadd.f32 %v988_v56, %v1631_v17  ;;  %v1314_v58 = vpop.f32.mrb[11].mxu0  ;;  %v993_v60 = vrot.slane %v988_v56, 4  ;;  %v1025_v17 = vld [vmem:[%s1773_s5] sm:$0xff] }
0x1406   :  { %v1383_v10 = vpack.c.bf16 %v1026_v8, %v1025_v17 }
0x1407   :  { %v1004_v59 = vrot.slane %v1002_v57, 4  ;;  %v995_v61 = vadd.f32 %v993_v60, %v165_v40 }
0x1408   :  { %1384 = vmatpush3.bf16.msra.mxu1 %v1383_v10 }
0x1409   :  { %1005 = vrot.lane.b32.xlu1 %v1004_v59, %s1529_s29  ;;  %v1156_v62 = vmul.f32 -1.442695, %v995_v61  ;;  %1385 = vmatprep.subr.bf16.mxu1 %v1526_v0  ;;  %v1157_v0 = vld [vmem:[%s1774_s6] ss:$0 sm:$0xff] }
0x140b   :  { %1440 = vpow2.f32 %v1156_v62 }
0x140c   :  { %1387 = vmatpush3.bf16.msra.mxu1 %v1386_v12 }
0x1415   :  { %v1441_v63 = vpop.eup %1440 }
0x1416   :  { %v999_v2 = vadd.f32 1.0, %v1441_v63 }
0x1418   :  { %1442 = vrcp.f32 %v999_v2 }
0x1422   :  { %v1443_v3 = vpop.eup %1442 }
0x1423   :  { %v1015_v16 = vsub.f32 1.0, %v1443_v3  ;;  %v1023_v21 = vmul.f32 %v1443_v3, %v1021_v14 }
0x147b   :  { %v1006_v4 = vpop.permute.xlu1 %1005 }
0x147c   :  { %v1008_v5 = vmul.f32 %v1443_v3, %v1006_v4 }
0x147e   :  { %1010 = vrot.lane.b32.xlu0 %v1008_v5, %s1529_s29 }
0x14f0   :  { %v1011_v6 = vpop.permute.xlu0 %1010 }
0x14f1   :  { %v1013_v7 = vadd.f32 %v1011_v6, %v165_v40 }
0x14f3   :  { %1444 = vtanh.f32 %v1013_v7 }
0x14fd   :  { %v1445_v13 = vpop.eup %1444 }
0x14fe   :  { %1017 = vrot.lane.b32.xlu1 %v1445_v13, %s1530_s13 }
0x1570   :  { %v1018_v18 = vpop.permute.xlu1 %1017 }
0x1571   :  { %v1020_v20 = vmul.f32 %v1018_v18, %v1015_v16 }
0x1573   :  { %v1024_v22 = vadd.f32 %v1023_v21, %v1020_v20 }
0x1575   :  { %v1037_v24 = vrot.slane %v1024_v22, 4 }
0x1577   :  { %1038 = vrot.lane.b32.xlu0 %v1037_v24, %s1530_s13 }
0x15e9   :  { %v1039_v9 = vpop.permute.xlu0 %1038 }
0x15ea   :  { %1324 = vmatmul.mubr.msk.f32.vlgmr.msra.gmra.mrb[8].mxu1 %vm70_vm1, %v1039_v9 }
0x16bd   :  { %v1108_v25 = vpop.f32.mrb[8].mxu1 }
0x16be   :  { %v1109_v26 = vadd.f32 %v1157_v0, %v1108_v25  ;;  %v1325_v19 = vpop.f32.mrb[9].mxu1 }
0x16c0   :  { %v1159_v15 = vmul.f32 -1.442695, %v1109_v26 }
0x16c2   :  { %1446 = vpow2.f32 %v1159_v15 }
0x16cc   :  { %v1447_v27 = vpop.eup %1446 }
0x16cd   :  { %v1115_v28 = vadd.f32 1.0, %v1447_v27 }
0x16cf   :  { %1448 = vrcp.f32 %v1115_v28 }
0x16d9   :  { %v1449_v29 = vpop.eup %1448 }
0x16da   :  { %1119 = vst.msk [vmem:[#allocation7] sm:$0xf] %vm1118_vm2, %v1449_v29 }
0x16db   :  { %1505 = shalt.err (!%p1502_p6)
}
0x16dc   :  { %s1506_s25 = scalar_lea.hbm %s1775_s7, 64 }
0x16dd   :  { %p1507_p7 = scmp.ne.s32.totalorder %s1775_s7, %s1506_s25  ;;  %p1510_p8 = scmp.lt.u32.totalorder %s1506_s25, %s1775_s7 }
0x16df   :  { %p1512_p9 = pnand %p1510_p8, %p1507_p7 }
0x16e1   :  { %1515 = shalt.err (!%p1512_p9)
}
0x16e2   :  { %1129 = dma.vmem_to_hbm [thread:$0]  %s1127_s23, 64, %s1775_s7, [#allocation4]  }
0x16e3   :  { %1520 = dma.done.wait [#allocation4], 64  }
0x16e4   :  { %1521 = vsyncadd [#allocation4], 4294967232 }
0x16e5   :  { %1133 = vsyncpa [#allocation3], 1 }
0x16e6   :  { %1134 = vsyncpa [#allocation6], 1 }
0x16e7   :  { %1135 = vsyncpa [#allocation4], 1 }

</bundles_post_ra>
